<compile_context>
chip_gen: v6e
topology: v6e:2x2x1
jax: 0.10.0
libtpu: 0.0.40
codegen_flags: <defaults>
</compile_context>

<pallas_src>
import jax
import jax.numpy as jnp
from jax import lax
from jax.experimental import pallas as pl
from jax.experimental.pallas import tpu as pltpu


_LANES = 128                       # TPU lane width (minor-dim padding)
_NEG_BIG = -1e30                   # exponent sentinel for masked-out rows
_VMEM_BLOCK_BUDGET = 32 * 1024 * 1024


def _round_up(x, m):
    return ((x + m - 1) // m) * m


def _block_footprint(blk, dp, feat_bytes):
    return (2 * 2 * blk * dp * feat_bytes   # a & b feature double-buffers
            + 4 * blk * blk * 4             # f32 (BLK,BLK) tile temporaries
            + 2 * 2 * 2 * blk * 4           # norm col/row double-buffers
            + 2 * 8 * _LANES * 4)           # output block buffers


def _choose_block(dp, n_max, feat_bytes):
    """Largest row/col tile whose per-step VMEM footprint fits the budget."""
    blk = 256
    for cand in (1024, 512, 256):
        if _block_footprint(cand, dp, feat_bytes) <= _VMEM_BLOCK_BUDGET:
            blk = cand
            break
    # Don't tile far beyond the (padded) number of rows.
    blk = min(blk, max(256, _round_up(n_max, 256)))
    return blk, _block_footprint(blk, dp, feat_bytes)


def _dcc_pair_kernel(two_gamma_ref, a_sel_ref, b_sel_ref, rowblk_ref, colblk_ref,
                     a_ref, b_ref, sa_ref, sb_ref, out_ref):
    """Accumulates sum_ij mask_a[i] mask_b[j] exp(-gamma*||a_i-b_j||^2) per (term, row-block)."""
    t = pl.program_id(0)   # 0 = ss, 1 = tt, 2 = st
    i = pl.program_id(1)
    j = pl.program_id(2)

    @pl.when(j == 0)
    def _init():
        out_ref[...] = jnp.zeros_like(out_ref)

    # Skip blocks past this term's real extent (n1/n2 may differ).
    in_range = jnp.logical_and(i < rowblk_ref[t], j < colblk_ref[t])
    # ss / tt kernels are symmetric with identical masks on both sides:
    # only evaluate j >= i blocks (off-diagonal blocks weighted 2x).
    symmetric_ok = jnp.logical_or(t == 2, j >= i)

    @pl.when(jnp.logical_and(in_range, symmetric_ok))
    def _compute():
        two_gamma = two_gamma_ref[0]
        # MXU: a . b^T in bf16 with f32 accumulation (only MXU pass per tile).
        ab = lax.dot_general(a_ref[...], b_ref[...], (((1,), (1,)), ((), ())),
                             preferred_element_type=jnp.float32)       # (blk, blk)
        # exponent = -gamma*(||a||^2 + ||b||^2 - 2 a.b).  Norms arrive already
        # scaled by -gamma and carry -1e30 where the class mask is 0, so masked
        # / padded pairs underflow to exactly 0 after exp — no mu multiply and
        # no second MXU pass.
        expo = sa_ref[...] + sb_ref[...] + two_gamma * ab               # VPU, f32
        kval = jnp.exp(expo)                                            # EUP, f32
        weight = jnp.where(jnp.logical_and(t != 2, j > i),
                           jnp.float32(2.0), jnp.float32(1.0))
        # Full-tile reduce (XLU lane reduce + sublane reduce) -> scalar, then
        # broadcast-accumulate into the (8,128)-aligned resident output block.
        out_ref[...] += weight * jnp.sum(kval)


def dcc_forward(c1, c2, tensor1, tensor2, label1, label2, gamma):
    """JAX wrapper reproducing DCC.forward (dist computed from the tensors)."""
    # TODO(synk): estimate_rbf_gamma (gamma=None path) is not defined in the
    # provided reference source; gamma must be supplied explicitly here.
    assert gamma is not None

    n1, d = tensor1.shape
    n2, d2 = tensor2.shape
    assert d == d2

    # bf16 on the MXU (native rate on all generations); everything elementwise
    # stays f32 (v5e has no bf16 VPU/EUP).  Norms are computed from the *cast*
    # features so ss/tt diagonal distances are ~0 exactly.
    in_dt = tensor1.dtype
    if jnp.issubdtype(in_dt, jnp.floating) and jnp.dtype(in_dt).itemsize <= 2:
        mat_dtype = in_dt
    else:
        mat_dtype = jnp.bfloat16
    feat_bytes = jnp.dtype(mat_dtype).itemsize

    dp = _round_up(d, _LANES)
    blk, footprint = _choose_block(dp, max(n1, n2), feat_bytes)
    np_ = _round_up(max(n1, n2), blk)
    g_n = np_ // blk

    def pad_feats(x):
        n, dd = x.shape
        return jnp.pad(x.astype(mat_dtype), ((0, np_ - n), (0, dp - dd)))

    x1 = pad_feats(tensor1)
    x2 = pad_feats(tensor2)
    feats = jnp.stack([x1, x2])                                   # (2, Np, Dp)

    gamma_f = jnp.asarray(gamma, jnp.float32)

    # Masked-and-scaled squared norms: -gamma*||x||^2 for in-class rows,
    # -1e30 otherwise (out-of-class and padded rows vanish after exp()).
    def masked_norm(x, labels, cls, n_valid):
        xf = x.astype(jnp.float32)
        sq = jnp.sum(xf * xf, axis=-1)                            # (Np,) f32
        m = jnp.pad(labels == cls, (0, np_ - n_valid))
        return jnp.where(m, -gamma_f * sq, jnp.float32(_NEG_BIG)), m

    sa1, m1 = masked_norm(x1, label1, c1, n1)
    sa2, m2 = masked_norm(x2, label2, c2, n2)
    norms = jnp.stack([sa1, sa2])                                 # (2, Np)
    norms_col = norms[:, :, None]                                 # (2, Np, 1) row side
    norms_row = norms[:, None, :]                                 # (2, 1, Np) col side (lane-dense)

    two_gamma = jnp.reshape(2.0 * gamma_f, (1,))
    # Operand selectors per term: ss=(x1,x1), tt=(x2,x2), st=(x1,x2).
    a_sel = jnp.array([0, 1, 0], jnp.int32)
    b_sel = jnp.array([0, 1, 1], jnp.int32)
    rb1, rb2 = pl.cdiv(n1, blk), pl.cdiv(n2, blk)
    row_blocks = jnp.array([rb1, rb2, rb1], jnp.int32)
    col_blocks = jnp.array([rb1, rb2, rb2], jnp.int32)

    # VMEM limit derived from actual block sizes (fits v7x's 64 MiB with room).
    vmem_limit = int(min(48 * 1024 * 1024, max(footprint + (8 << 20), 16 << 20)))

    out = pl.pallas_call(
        _dcc_pair_kernel,
        out_shape=jax.ShapeDtypeStruct((3, g_n * 8, _LANES), jnp.float32),
        grid_spec=pltpu.PrefetchScalarGridSpec(
            num_scalar_prefetch=5,          # 2*gamma, a_sel, b_sel, row/col block counts
            grid=(3, g_n, g_n),
            in_specs=[
                # a-side features (rows of the kernel matrix)
                pl.BlockSpec((None, blk, dp),
                             lambda t, i, j, g, asel, bsel, rb, cb: (asel[t], i, 0)),
                # b-side features (columns)
                pl.BlockSpec((None, blk, dp),
                             lambda t, i, j, g, asel, bsel, rb, cb: (bsel[t], j, 0)),
                # masked/scaled ||a||^2, (blk,1) column layout
                pl.BlockSpec((None, blk, 1),
                             lambda t, i, j, g, asel, bsel, rb, cb: (asel[t], i, 0)),
                # masked/scaled ||b||^2, (1,blk) lane-dense row layout
                pl.BlockSpec((None, 1, blk),
                             lambda t, i, j, g, asel, bsel, rb, cb: (bsel[t], 0, j)),
            ],
            out_specs=pl.BlockSpec(
                (None, 8, _LANES),
                lambda t, i, j, g, asel, bsel, rb, cb: (t, i, 0)),
        ),
        compiler_params=pltpu.CompilerParams(
            # term + row-block axes split across TensorCores; column axis is a
            # reduction into the resident (8,128) output block.
            dimension_semantics=("parallel", "parallel", "arbitrary"),
            vmem_limit_bytes=vmem_limit,
        ),
    )(two_gamma, a_sel, b_sel, row_blocks, col_blocks,
      feats, feats, norms_col, norms_row)

    # Every element of an (8,128) tile carries the same (term, row-block) sum.
    sums = jnp.sum(out[:, ::8, 0], axis=1)                        # (3,) ss, tt, st

    c1n = jnp.sum(m1.astype(jnp.float32))
    c2n = jnp.sum(m2.astype(jnp.float32))
    # sum(mu) factorizes: sum(mu_ss)=c1n^2, sum(mu_tt)=c2n^2, sum(mu_st)=c1n*c2n.
    # A class with zero members yields NaN, matching the PyTorch reference.
    return (sums[0] / (c1n * c1n)
            + sums[1] / (c2n * c2n)
            - 2.0 * sums[2] / (c1n * c2n))


def _dcc_reference(c1, c2, tensor1, tensor2, label1, label2, gamma):
    """Pure-JAX f32 reference mirroring the PyTorch module (for validation)."""
    def sqdist(a, b):
        return (jnp.sum(a * a, -1, keepdims=True)
                + jnp.sum(b * b, -1, keepdims=True).T
                - 2.0 * a @ b.T)

    d_ss, d_tt, d_st = sqdist(tensor1, tensor1), sqdist(tensor2, tensor2), sqdist(tensor1, tensor2)
    m1 = (label1 == c1).astype(jnp.float32)
    m2 = (label2 == c2).astype(jnp.float32)
    mu_ss = m1[:, None] * m1[None, :]
    mu_tt = m2[:, None] * m2[None, :]
    mu_st = m1[:, None] * m2[None, :]
    e1 = jnp.sum(mu_ss * jnp.exp(-gamma * d_ss)) / mu_ss.sum()
    e2 = jnp.sum(mu_tt * jnp.exp(-gamma * d_tt)) / mu_tt.sum()
    e3 = jnp.sum(mu_st * jnp.exp(-gamma * d_st)) / mu_st.sum()
    return e1 + e2 - 2.0 * e3


if __name__ == "__main__":
    key = jax.random.PRNGKey(0)
    k1, k2 = jax.random.split(key)

    N1, N2, D = 24, 16, 32
    tensor1 = jax.random.normal(k1, (N1, D), dtype=jnp.float32)
    tensor2 = jax.random.normal(k2, (N2, D), dtype=jnp.float32)
    label1 = jnp.arange(N1, dtype=jnp.int32) % 3          # classes 0/1/2 present
    label2 = (jnp.arange(N2, dtype=jnp.int32) + 1) % 3
    c1, c2 = 0, 1
    gamma = 0.5

    dcc = jax.block_until_ready(
        dcc_forward(c1, c2, tensor1, tensor2, label1, label2, gamma))

    ref = _dcc_reference(c1, c2, tensor1, tensor2, label1, label2, gamma)
    assert jnp.allclose(dcc, ref, rtol=2e-3, atol=1e-4), (dcc, ref)

    print("KERNEL_OK")
</pallas_src>

<mosaic_0001>
module attributes {stable_mosaic.version = 11 : i64} {
  func.func @_dcc_pair_kernel(%arg0: i32, %arg1: i32, %arg2: i32, %arg3: memref<1xf32, #tpu.memory_space<smem>>, %arg4: memref<3xi32, #tpu.memory_space<smem>>, %arg5: memref<3xi32, #tpu.memory_space<smem>>, %arg6: memref<3xi32, #tpu.memory_space<smem>>, %arg7: memref<3xi32, #tpu.memory_space<smem>>, %arg8: memref<1x256x128xbf16, #tpu.memory_space<vmem>>, %arg9: memref<1x256x128xbf16, #tpu.memory_space<vmem>>, %arg10: memref<1x256x1xf32, #tpu.memory_space<vmem>>, %arg11: memref<1x1x256xf32, #tpu.memory_space<vmem>>, %arg12: memref<1x8x128xf32, #tpu.memory_space<vmem>>) attributes {dimension_semantics = [#tpu.dimension_semantics<parallel>, #tpu.dimension_semantics<parallel>, #tpu.dimension_semantics<arbitrary>], iteration_bounds = array<i64: 3, 1, 1>, scalar_prefetch = 5 : i64, scratch_operands = 0 : i64, tpu.core_type = #tpu.core_type<tc>, window_params = [{transform_indices = @transform_0, window_bounds = array<i64: 1, 256, 128>}, {transform_indices = @transform_1, window_bounds = array<i64: 1, 256, 128>}, {transform_indices = @transform_2, window_bounds = array<i64: 1, 256, 1>}, {transform_indices = @transform_3, window_bounds = array<i64: 1, 1, 256>}, {transform_indices = @transform_4, window_bounds = array<i64: 1, 8, 128>}]} {
    %c0_i32 = arith.constant 0 : i32
    %0 = arith.cmpi eq, %arg2, %c0_i32 : i32
    %1 = arith.extui %0 : i1 to i32
    %c0_i32_0 = arith.constant 0 : i32
    %2 = arith.cmpi ne, %1, %c0_i32_0 : i32
    scf.if %2 {
      %cst = arith.constant 0.000000e+00 : f32
      %16 = vector.broadcast %cst : f32 to vector<8x128xf32>
      %c0 = arith.constant 0 : index
      %c0_2 = arith.constant 0 : index
      %c0_3 = arith.constant 0 : index
      %17 = vector.load %arg12[%c0, %c0_2, %c0_3] : memref<1x8x128xf32, #tpu.memory_space<vmem>>, vector<1x8x128xf32>
      %18 = vector.shape_cast %17 : vector<1x8x128xf32> to vector<8x128xf32>
      %19 = vector.shape_cast %16 : vector<8x128xf32> to vector<1x8x128xf32>
      tpu.vector_store %arg12[%c0, %c0_2, %c0_3], %19 {strides = array<i32>} : memref<1x8x128xf32, #tpu.memory_space<vmem>>, vector<1x8x128xf32>,
    } else {
    }
    %3 = arith.index_cast %arg0 : i32 to index
    %4 = memref.load %arg6[%3] : memref<3xi32, #tpu.memory_space<smem>>
    %5 = arith.cmpi slt, %arg1, %4 : i32
    %6 = arith.index_cast %arg0 : i32 to index
    %7 = memref.load %arg7[%6] : memref<3xi32, #tpu.memory_space<smem>>
    %8 = arith.cmpi slt, %arg2, %7 : i32
    %9 = arith.andi %5, %8 : i1
    %c2_i32 = arith.constant 2 : i32
    %10 = arith.cmpi eq, %arg0, %c2_i32 : i32
    %11 = arith.cmpi sge, %arg2, %arg1 : i32
    %12 = arith.ori %10, %11 : i1
    %13 = arith.andi %9, %12 : i1
    %14 = arith.extui %13 : i1 to i32
    %c0_i32_1 = arith.constant 0 : i32
    %15 = arith.cmpi ne, %14, %c0_i32_1 : i32
    scf.if %15 {
      %c0 = arith.constant 0 : index
      %16 = memref.load %arg3[%c0] : memref<1xf32, #tpu.memory_space<smem>>
      %c0_2 = arith.constant 0 : index
      %c0_3 = arith.constant 0 : index
      %c0_4 = arith.constant 0 : index
      %17 = vector.load %arg8[%c0_2, %c0_3, %c0_4] : memref<1x256x128xbf16, #tpu.memory_space<vmem>>, vector<1x256x128xbf16>
      %18 = vector.shape_cast %17 : vector<1x256x128xbf16> to vector<256x128xbf16>
      %c0_5 = arith.constant 0 : index
      %c0_6 = arith.constant 0 : index
      %c0_7 = arith.constant 0 : index
      %19 = vector.load %arg9[%c0_5, %c0_6, %c0_7] : memref<1x256x128xbf16, #tpu.memory_space<vmem>>, vector<1x256x128xbf16>
      %20 = vector.shape_cast %19 : vector<1x256x128xbf16> to vector<256x128xbf16>
      %cst = arith.constant dense<0.000000e+00> : vector<256x256xf32>
      %21 = tpu.matmul %18, %20, %cst {dimension_numbers = #tpu.dot_dimension_numbers<[1], [1], [0], [0], [0, 0, 1, 0], [], []>} : vector<256x128xbf16>, vector<256x128xbf16>, vector<256x256xf32> -> vector<256x256xf32>
      %c0_8 = arith.constant 0 : index
      %c0_9 = arith.constant 0 : index
      %c0_10 = arith.constant 0 : index
      %22 = vector.load %arg10[%c0_8, %c0_9, %c0_10] : memref<1x256x1xf32, #tpu.memory_space<vmem>>, vector<1x256x1xf32>
      %23 = vector.shape_cast %22 : vector<1x256x1xf32> to vector<256x1xf32>
      %c0_11 = arith.constant 0 : index
      %c0_12 = arith.constant 0 : index
      %c0_13 = arith.constant 0 : index
      %24 = vector.load %arg11[%c0_11, %c0_12, %c0_13] : memref<1x1x256xf32, #tpu.memory_space<vmem>>, vector<1x1x256xf32>
      %25 = vector.shape_cast %24 : vector<1x1x256xf32> to vector<1x256xf32>
      %26 = vector.broadcast %23 : vector<256x1xf32> to vector<256x256xf32>
      %27 = vector.broadcast %25 : vector<1x256xf32> to vector<256x256xf32>
      %28 = arith.addf %26, %27 : vector<256x256xf32>
      %29 = vector.broadcast %16 : f32 to vector<256x256xf32>
      %30 = arith.mulf %29, %21 : vector<256x256xf32>
      %31 = arith.addf %28, %30 : vector<256x256xf32>
      %32 = math.exp %31 : vector<256x256xf32>
      %c2_i32_14 = arith.constant 2 : i32
      %33 = arith.cmpi ne, %arg0, %c2_i32_14 : i32
      %34 = arith.cmpi sgt, %arg2, %arg1 : i32
      %35 = arith.andi %33, %34 : i1
      %cst_15 = arith.constant 2.000000e+00 : f32
      %cst_16 = arith.constant 1.000000e+00 : f32
      %36 = arith.select %35, %cst_15, %cst_16 : f32
      %c0_17 = arith.constant 0 : index
      %c0_18 = arith.constant 0 : index
      %c0_19 = arith.constant 0 : index
      %37 = vector.load %arg12[%c0_17, %c0_18, %c0_19] : memref<1x8x128xf32, #tpu.memory_space<vmem>>, vector<1x8x128xf32>
      %38 = vector.shape_cast %37 : vector<1x8x128xf32> to vector<8x128xf32>
      %39 = vector.shape_cast %32 : vector<256x256xf32> to vector<1x256x256xf32>
      %cst_20 = arith.constant dense<0.000000e+00> : vector<1xf32>
      %40 = vector.multi_reduction <add>, %39, %cst_20 [1, 2] : vector<1x256x256xf32> to vector<1xf32>
      %41 = vector.shape_cast %40 : vector<1xf32> to vector<1x1x1xf32>
      %42 = vector.extract %41[0, 0, 0] : f32 from vector<1x1x1xf32>
      %43 = arith.mulf %36, %42 : f32
      %44 = vector.broadcast %43 : f32 to vector<8x128xf32>
      %45 = arith.addf %38, %44 : vector<8x128xf32>
      %c0_21 = arith.constant 0 : index
      %c0_22 = arith.constant 0 : index
      %c0_23 = arith.constant 0 : index
      %46 = vector.load %arg12[%c0_21, %c0_22, %c0_23] : memref<1x8x128xf32, #tpu.memory_space<vmem>>, vector<1x8x128xf32>
      %47 = vector.shape_cast %46 : vector<1x8x128xf32> to vector<8x128xf32>
      %48 = vector.shape_cast %45 : vector<8x128xf32> to vector<1x8x128xf32>
      tpu.vector_store %arg12[%c0_21, %c0_22, %c0_23], %48 {strides = array<i32>} : memref<1x8x128xf32, #tpu.memory_space<vmem>>, vector<1x8x128xf32>,
    } else {
    }
    return
  }
  func.func @transform_0(%arg0: i32, %arg1: i32, %arg2: i32, %arg3: memref<1xf32, #tpu.memory_space<smem>>, %arg4: memref<3xi32, #tpu.memory_space<smem>>, %arg5: memref<3xi32, #tpu.memory_space<smem>>, %arg6: memref<3xi32, #tpu.memory_space<smem>>, %arg7: memref<3xi32, #tpu.memory_space<smem>>) -> (i32, i32, i32) {
    %0 = arith.index_cast %arg0 : i32 to index
    %1 = memref.load %arg4[%0] : memref<3xi32, #tpu.memory_space<smem>>
    %c0_i32 = arith.constant 0 : i32
    %c0_i32_0 = arith.constant 0 : i32
    return %1, %arg1, %c0_i32 : i32, i32, i32
  }
  func.func @transform_1(%arg0: i32, %arg1: i32, %arg2: i32, %arg3: memref<1xf32, #tpu.memory_space<smem>>, %arg4: memref<3xi32, #tpu.memory_space<smem>>, %arg5: memref<3xi32, #tpu.memory_space<smem>>, %arg6: memref<3xi32, #tpu.memory_space<smem>>, %arg7: memref<3xi32, #tpu.memory_space<smem>>) -> (i32, i32, i32) {
    %0 = arith.index_cast %arg0 : i32 to index
    %1 = memref.load %arg5[%0] : memref<3xi32, #tpu.memory_space<smem>>
    %c0_i32 = arith.constant 0 : i32
    %c0_i32_0 = arith.constant 0 : i32
    return %1, %arg2, %c0_i32 : i32, i32, i32
  }
  func.func @transform_2(%arg0: i32, %arg1: i32, %arg2: i32, %arg3: memref<1xf32, #tpu.memory_space<smem>>, %arg4: memref<3xi32, #tpu.memory_space<smem>>, %arg5: memref<3xi32, #tpu.memory_space<smem>>, %arg6: memref<3xi32, #tpu.memory_space<smem>>, %arg7: memref<3xi32, #tpu.memory_space<smem>>) -> (i32, i32, i32) {
    %0 = arith.index_cast %arg0 : i32 to index
    %1 = memref.load %arg4[%0] : memref<3xi32, #tpu.memory_space<smem>>
    %c0_i32 = arith.constant 0 : i32
    %c0_i32_0 = arith.constant 0 : i32
    return %1, %arg1, %c0_i32 : i32, i32, i32
  }
  func.func @transform_3(%arg0: i32, %arg1: i32, %arg2: i32, %arg3: memref<1xf32, #tpu.memory_space<smem>>, %arg4: memref<3xi32, #tpu.memory_space<smem>>, %arg5: memref<3xi32, #tpu.memory_space<smem>>, %arg6: memref<3xi32, #tpu.memory_space<smem>>, %arg7: memref<3xi32, #tpu.memory_space<smem>>) -> (i32, i32, i32) {
    %0 = arith.index_cast %arg0 : i32 to index
    %1 = memref.load %arg5[%0] : memref<3xi32, #tpu.memory_space<smem>>
    %c0_i32 = arith.constant 0 : i32
    %c0_i32_0 = arith.constant 0 : i32
    return %1, %c0_i32, %arg2 : i32, i32, i32
  }
  func.func @transform_4(%arg0: i32, %arg1: i32, %arg2: i32, %arg3: memref<1xf32, #tpu.memory_space<smem>>, %arg4: memref<3xi32, #tpu.memory_space<smem>>, %arg5: memref<3xi32, #tpu.memory_space<smem>>, %arg6: memref<3xi32, #tpu.memory_space<smem>>, %arg7: memref<3xi32, #tpu.memory_space<smem>>) -> (i32, i32, i32) {
    %c0_i32 = arith.constant 0 : i32
    %c0_i32_0 = arith.constant 0 : i32
    return %arg0, %arg1, %c0_i32 : i32, i32, i32
  }
}

</mosaic_0001>

<bundles_post_ra>
// kernel: tpu_custom_call.1
= control target key start
LH: loop header
LB: loop body
LE: loop exit
PB: predicated region body
PF: predicated region fallthrough
CT: control target
= control target key end

     0   :  { %s2069_s14 = smov [#allocation4]   ;;  %s2070_s17 = smov [#allocation5]   ;;  %s2553_s0 = inlined_call_operand.<no memory space> [shape: f32[1], index: 0, kind: input, shape index: {}]   ;;  %s2554_s1 = inlined_call_operand.hbm [shape: s32[3], index: 1, kind: input, shape index: {}]   ;;  %s2555_s5 = inlined_call_operand.vmem [shape: bf16[2,256,128], index: 5, kind: input, shape index: {}]   ;;  %s2556_s6 = inlined_call_operand.vmem [shape: bf16[2,256,128], index: 6, kind: input, shape index: {}]   ;;  %s2557_s7 = inlined_call_operand.vmem [shape: f32[2,256,1], index: 7, kind: input, shape index: {}]   ;;  %s2558_s8 = inlined_call_operand.vmem [shape: f32[2,1,256], index: 8, kind: input, shape index: {}]   ;;  %s2559_s9 = inlined_call_operand.hbm [shape: f32[3,8,128], index: 9, kind: output, shape index: {}]   ;;  %s2560_s2 = inlined_call_operand.hbm [shape: s32[3], index: 2, kind: input, shape index: {}]   ;;  %s2561_s3 = inlined_call_operand.vmem [shape: s32[3], index: 3, kind: input, shape index: {}]   ;;  %s2562_s4 = inlined_call_operand.vmem [shape: s32[3], index: 4, kind: input, shape index: {}]  }
   0x1   :  { %14 = sst [smem:[#allocation3]] %s2553_s0  ;;  %s19_s13 = sshll.u32 %s2561_s3, 4  ;;  %s20_s13 = int_to_ptr.vmem [resolvable:$true] %s19_s13 }
   0x2   :  { %16 = dma.hbm_to_smem %s2554_s1, 16, %s2069_s14, [#allocation2] }
   0x3   :  { %18 = dma.hbm_to_smem %s2560_s2, 16, %s2070_s17, [#allocation2] }
   0x4   :  { %s1965_s20 = scalar_lea.vmem %s20_s13, 16  ;;  %p1970_p1 = scmp.lt.s32.totalorder %s20_s13, %s20_s13 }
   0x5   :  { %p1966_p0 = scmp.ne.s32.totalorder %s20_s13, %s1965_s20  ;;  %p1971_p2 = scmp.lt.s32.totalorder %s1965_s20, %s1965_s20 }
   0x7   :  { %p1972_p3 = por %p1971_p2, %p1970_p1 }
   0x9   :  { %p1973_p4 = pnand %p1972_p3, %p1966_p0 }
   0xb   :  { %1976 = shalt.err (!%p1973_p4)  }
   0xc   :  { %s2071_s0 = smov [#allocation6]   ;;  %s23_s22 = sshll.u32 %s2562_s4, 4  ;;  %s24_s22 = int_to_ptr.vmem [resolvable:$true] %s23_s22 }
   0xd   :  { %22 = dma.vmem_to_smem %s20_s13, 16, %s2071_s0, [#allocation2] }
   0xe   :  { %s1977_s1 = scalar_lea.vmem %s24_s22, 16  ;;  %p1982_p6 = scmp.lt.s32.totalorder %s24_s22, %s24_s22 }
   0xf   :  { %p1978_p5 = scmp.ne.s32.totalorder %s24_s22, %s1977_s1  ;;  %p1983_p7 = scmp.lt.s32.totalorder %s1977_s1, %s1977_s1 }
  0x11   :  { %p1984_p8 = por %p1983_p7, %p1982_p6 }
  0x13   :  { %p1985_p9 = pnand %p1984_p8, %p1978_p5 }
  0x15   :  { %1988 = shalt.err (!%p1985_p9)  }
  0x16   :  { %s2072_s2 = smov [#allocation7]  }
  0x17   :  { %26 = dma.vmem_to_smem %s24_s22, 16, %s2072_s2, [#allocation2] }
  0x18   :  { %2039 = dma.done.wait [#allocation2], 64 }
  0x19   :  { %2040 = vsyncadd [#allocation2], 4294967232 }
  0x1a   :  { %28 = sfence }
  0x1b   :  { %29 = vsyncpa [#allocation9], 0 }
  0x1c   :  { %31 = vsyncpa [#allocation9 + $0x1], 0  ;;  %s2141_s23 = smov 0   ;;  %s2143_s24 = smov 0  }
  0x1d   :  { %s2145_s4 = smov 0   ;;  %s2147_s25 = smov 0  }
  0x1e   :  { %s2149_s26 = smov 0   ;;  %s2151_s27 = smov 0  }
  0x1f LB: > { %2566 = sst [smem:[#allocation12_spill]] %s2063_s26  ;;  %s1605_s28 = sadd.s32 4294967295, %s2067_s27   ;;  %s2067_s27 = sphi %s2151_s27, %s37_s27   ;;  %s2063_s26 = sphi %s2149_s26, %s2574_s26   ;;  %s2059_s25 = sphi %s2147_s25, %s2573_s25   ;;  %s2055_s4 = sphi %s2145_s4, %s2577_s4   ;;  %s2051_s24 = sphi %s2143_s24, %s2576_s24   ;;  %s2047_s23 = sphi %s2141_s23, %s2575_s23  }
  0x20   : > { %s1606_s29 = sadd.s32 4294967294, %s2067_s27   ;;  %s56_s30 = sadd.s32 1, %s2063_s26 }
  0x21   : > { %s185_s10 = sadd.s32 1, %s2055_s4  ;;  %p58_p10 = scmp.ge.s32.totalorder %s56_s30, 3 }
  0x22   : > { %p195_p11 = scmp.ne.s32.totalorder %s2055_s4, %s2051_s24  ;;  %p196_p12 = scmp.eq.s32.totalorder %s1605_s28, 2 }
  0x23   : > { %p201_p13 = scmp.ne.s32.totalorder %s2051_s24, %s2047_s23  ;;  %s2579_s30 = smov (%p58_p10, %s56_s30), 0 }
  0x24   : > { %2567 = sst [smem:[#allocation13_spill]] %s2579_s30  ;;  %p2181_p0 = por %p196_p12, %p195_p11 }
  0x25   : > { %p202_p1 = scmp.eq.s32.totalorder %s1606_s29, 2  ;;  %s180_s12 = ssub.s32 %s2063_s26, %s2579_s30 }
  0x26   : > { %p1609_p2 = scmp.ge.s32.totalorder %s2067_s27, 1  ;;  %p183_p3 = scmp.eq.s32.totalorder %s180_s12, 0 }
  0x27   : > { %p2188_p4 = por %p202_p1, %p201_p13  ;;  %p279_p5 = scmp.lt.s32.totalorder %s2067_s27, 4 }
  0x28   : > { %s2194_s14 = scalar_select %p183_p3, %s2055_s4, %s185_s10  }
  0x29   : > { %p280_p6 = pnand %p1609_p2, %p279_p5 }
  0x2a   : > { %2570 = sst [smem:[#allocation14_spill]] %s2194_s14  ;;  %s2563_s15 = sand.u32 (!%p280_p6), 1, %s2051_s24  }
  0x2b   : > { %283 = sbr.rel (%p280_p6) target bundleno = 703 (0x2bf), region = 36  ;;  %s339_s16 = sld [smem:[#allocation4 + %s2059_s25]] (!%p280_p6) }
  0x2c   : > { %s1610_s17 = sshll.u32 (!%p280_p6), %s2563_s15, 3  ;;  %s351_s18 = sld [smem:[#allocation5 + %s2059_s25]] (!%p280_p6) }
  0x2d   : > { %s363_s19 = sld [smem:[#allocation4 + %s2059_s25]] (!%p280_p6)  ;;  %s2202_s20 = scalar_lea.vmem (!%p280_p6), [#allocation8], %s1610_s17 }
  0x2e   : > { %s375_s0 = sld [smem:[#allocation5 + %s2059_s25]] (!%p280_p6) }
  0x2f   : > { %s392_s3 = sld [smem:[#allocation6 + %s2059_s25]] (!%p280_p6) }
  0x30   : > { %v2073_v0 = vmov 0.0   ;;  %s394_s21 = sld [smem:[#allocation7 + %s2059_s25]] }
  0x31   : > { %391 = vst [vmem:[%s2202_s20] sm:$0xff] %v2073_v0  ;;  %p341_p7 = scmp.lt.s32.totalorder %s339_s16, 1 }
  0x32   : > { %p353_p8 = scmp.lt.s32.totalorder %s351_s18, 1 }
  0x33   : > { %s2581_s16 = smov (!%p341_p7, %s339_s16), 1  ;;  %p365_p9 = scmp.lt.s32.totalorder %s363_s19, 1 }
  0x34   : > { %s2583_s18 = smov (!%p353_p8, %s351_s18), 1  ;;  %s1657_s22 = sshll.u32 %s2581_s16, 7 }
  0x35   : > { %s2211_s28 = scalar_lea.vmem %s2555_s5, %s1657_s22  ;;  %s1658_s29 = sshll.u32 %s2583_s18, 7 }
  0x36   : > { %s2216_s17 = scalar_lea.vmem %s2556_s6, %s1658_s29  ;;  %p377_p10 = scmp.lt.s32.totalorder %s375_s0, 1 }
  0x37   : > { %s2585_s19 = smov (!%p365_p9, %s363_s19), 1  ;;  %p1618_p11 = scmp.gt.s32.totalorder %s392_s3, 0 }
  0x38   : > { %s2587_s0 = smov (!%p377_p10, %s375_s0), 1  ;;  %s1659_s15 = sshll.u32 %s2585_s19, 8 }
  0x39   : > { %s2221_s16 = scalar_lea.vmem %s2557_s7, %s1659_s15  ;;  %s1617_s14 = sshll.u32 %s2587_s0, 1 }
  0x3a   : > { %s2226_s18 = scalar_lea.vmem %s2558_s8, %s1617_s14  ;;  %p1619_p12 = scmp.gt.s32.totalorder %s394_s21, 0 }
  0x3c   : > { %p396_p13 = pnand %p1619_p12, %p1618_p11 }
  0x3d   : > { %s405_s26 = sld [smem:[#allocation3]] (!%p396_p13) }
  0x3e   : > { %404 = sbr.rel (%p396_p13) target bundleno = 679 (0x2a7), region = 44 }
  0x43   : > { %v1789_v1 = vld [vmem:[%s2216_s17 + $0x78] sm:$0xff]   ;;  %v2074_v3 = vmov 0   ;;  %v1791_v4 = vld [vmem:[%s2216_s17 + $0x70] sm:$0xff]   ;;  %v1793_v6 = vld [vmem:[%s2216_s17 + $0x68] sm:$0xff]  }
  0x44   : > { %v1790_v2 = vld [vmem:[%s2216_s17 + $0x38] sm:$0xff]   ;;  %1787 = vset.pattern.permute.xlu0 %v2074_v3  ;;  %1788 = vset.pattern.permute.xlu1 %v2074_v3  ;;  %v1792_v5 = vld [vmem:[%s2216_s17 + $0x30] sm:$0xff]   ;;  %v1794_v7 = vld [vmem:[%s2216_s17 + $0x28] sm:$0xff]  }
  0x45   : > { %1660 = vmatprep.subr.bf16.mxu0 %v1789_v1  ;;  %1708 = vmatprep.subr.bf16.mxu1 %v1789_v1  ;;  %v1795_v8 = vld [vmem:[%s2216_s17 + $0x60] sm:$0xff]   ;;  %v856_v12 = vld [vmem:[%s2221_s16 + $0x8] sm:$0xff]  ;;  %v857_v13 = vld [vmem:[%s2221_s16 + $0x10] sm:$0xff] }
  0x46   : > { %1661 = vmatpush3.bf16.xpose.msra.mxu0 %v1790_v2  ;;  %1716 = vmatpush3.bf16.xpose.msra.mxu1 %v1790_v2  ;;  %v2236_v9 = vld [vmem:[%s2211_s28] sm:$0xff]   ;;  %v1797_v15 = vld [vmem:[%s2216_s17 + $0x58] sm:$0xff]   ;;  %v861_v18 = vld [vmem:[%s2221_s16 + $0x30] sm:$0xff]  ;;  %v1049_v2 = vlaneseq }
  0x47   : > { %1662 = vmatprep.subr.bf16.mxu0 %v1791_v4  ;;  %1709 = vmatprep.subr.bf16.mxu1 %v1791_v4  ;;  %v2239_v10 = vld [vmem:[%s2211_s28 + $0x40] sm:$0xff]   ;;  %v858_v17 = vld [vmem:[%s2221_s16 + $0x18] sm:$0xff]  ;;  %v860_v19 = vld [vmem:[%s2221_s16 + $0x28] sm:$0xff] }
  0x48   : > { %1676 = vmatprep.mubr.bf16.mxu0 %v2236_v9  ;;  %v855_v11 = vld [vmem:[%s2221_s16] sm:$0xff]  ;;  %1692 = vmatprep.mubr.bf16.mxu1 %v2239_v10  ;;  %v1798_v20 = vld [vmem:[%s2216_s17 + $0x18] sm:$0xff]   ;;  %v1799_v21 = vld [vmem:[%s2216_s17 + $0x50] sm:$0xff]   ;;  %v1050_v3 = vshrl.u32 %v1049_v2, 7 }
  0x49   : > { %890 = vperm.xlu0 %1787, %v855_v11   ;;  %v1796_v14 = vld [vmem:[%s2216_s17 + $0x20] sm:$0xff]   ;;  %900 = vperm.xlu1 %1788, %v857_v13   ;;  %v862_v23 = vld [vmem:[%s2221_s16 + $0x38] sm:$0xff]  ;;  %v865_v24 = vld [vmem:[%s2221_s16 + $0x50] sm:$0xff] }
  0x4a   : > { %v859_v16 = vld [vmem:[%s2221_s16 + $0x20] sm:$0xff]  ;;  %v864_v25 = vld [vmem:[%s2221_s16 + $0x48] sm:$0xff]  ;;  %v1800_v26 = vld [vmem:[%s2216_s17 + $0x10] sm:$0xff]   ;;  %v1051_v4 = vsub.s32 0, %v1050_v3 }
  0x4b   : > { %v863_v22 = vld [vmem:[%s2221_s16 + $0x40] sm:$0xff]  ;;  %v1801_v27 = vld [vmem:[%s2216_s17 + $0x48] sm:$0xff]   ;;  %v866_v29 = vld [vmem:[%s2221_s16 + $0x58] sm:$0xff] }
  0x4c   : > { %v867_v28 = vld [vmem:[%s2221_s16 + $0x60] sm:$0xff]  ;;  %v869_v30 = vld [vmem:[%s2221_s16 + $0x70] sm:$0xff]  ;;  %v868_v31 = vld [vmem:[%s2221_s16 + $0x68] sm:$0xff] }
  0x4d   : > { %895 = vperm.xlu0 %1787, %v856_v12   ;;  %905 = vperm.xlu1 %1788, %v858_v17   ;;  %v1802_v32 = vld [vmem:[%s2216_s17 + $0x8] sm:$0xff]   ;;  %v1803_v33 = vld [vmem:[%s2216_s17 + $0x40] sm:$0xff]   ;;  %v870_v35 = vld [vmem:[%s2221_s16 + $0x78] sm:$0xff] }
  0x4e   : > { %1663 = vmatpush3.bf16.xpose.msra.mxu0 %v1792_v5  ;;  %1717 = vmatpush3.bf16.xpose.msra.mxu1 %v1792_v5  ;;  %v871_v34 = vld [vmem:[%s2221_s16 + $0x80] sm:$0xff]  ;;  %v873_v36 = vld [vmem:[%s2221_s16 + $0x90] sm:$0xff]  ;;  %v872_v37 = vld [vmem:[%s2221_s16 + $0x88] sm:$0xff] }
  0x4f   : > { %1664 = vmatprep.subr.bf16.mxu0 %v1793_v6  ;;  %1710 = vmatprep.subr.bf16.mxu1 %v1793_v6  ;;  %v1804_v38 = vld [vmem:[%s2216_s17] sm:$0xff]   ;;  %v874_v40 = vld [vmem:[%s2221_s16 + $0x98] sm:$0xff]  ;;  %v877_v41 = vld [vmem:[%s2221_s16 + $0xb0] sm:$0xff] }
  0x50   : > { %v875_v39 = vld [vmem:[%s2221_s16 + $0xa0] sm:$0xff]  ;;  %v876_v42 = vld [vmem:[%s2221_s16 + $0xa8] sm:$0xff]  ;;  %v878_v46 = vld [vmem:[%s2221_s16 + $0xb8] sm:$0xff] }
  0x51   : > { %910 = vperm.xlu0 %1787, %v859_v16   ;;  %915 = vperm.xlu1 %1788, %v860_v19   ;;  %v1807_v43 = vld [vmem:[%s2211_s28 + $0x8] sm:$0xff]   ;;  %v879_v45 = vld [vmem:[%s2221_s16 + $0xc0] sm:$0xff]  ;;  %v881_v47 = vld [vmem:[%s2221_s16 + $0xd0] sm:$0xff] }
  0x52   : > { %v1808_v44 = vld [vmem:[%s2211_s28 + $0x48] sm:$0xff]   ;;  %v1809_v49 = vld [vmem:[%s2211_s28 + $0x10] sm:$0xff]   ;;  %v883_v51 = vld [vmem:[%s2221_s16 + $0xe0] sm:$0xff] }
  0x53   : > { %v880_v48 = vld [vmem:[%s2221_s16 + $0xc8] sm:$0xff]  ;;  %v1810_v50 = vld [vmem:[%s2211_s28 + $0x50] sm:$0xff]   ;;  %v882_v52 = vld [vmem:[%s2221_s16 + $0xd8] sm:$0xff] }
  0x54   : > { %v885_v53 = vld [vmem:[%s2221_s16 + $0xf0] sm:$0xff]  ;;  %v884_v54 = vld [vmem:[%s2221_s16 + $0xe8] sm:$0xff]  ;;  %v1811_v55 = vld [vmem:[%s2211_s28 + $0x18] sm:$0xff]  }
  0x55   : > { %920 = vperm.xlu0 %1787, %v861_v18   ;;  %925 = vperm.xlu1 %1788, %v862_v23   ;;  %v1812_v56 = vld [vmem:[%s2211_s28 + $0x58] sm:$0xff]   ;;  %v1813_v58 = vld [vmem:[%s2211_s28 + $0x20] sm:$0xff]   ;;  %v1815_v60 = vld [vmem:[%s2211_s28 + $0x28] sm:$0xff]  }
  0x56   : > { %1665 = vmatpush3.bf16.xpose.msra.mxu0 %v1794_v7  ;;  %1718 = vmatpush3.bf16.xpose.msra.mxu1 %v1794_v7  ;;  %v886_v57 = vld [vmem:[%s2221_s16 + $0xf8] sm:$0xff]  ;;  %v1814_v59 = vld [vmem:[%s2211_s28 + $0x60] sm:$0xff]   ;;  %v1816_v61 = vld [vmem:[%s2211_s28 + $0x68] sm:$0xff]   ;;  %v1055_v7 = vsub.s32 1, %v1050_v3 }
  0x57   : > { %1666 = vmatprep.subr.bf16.mxu0 %v1795_v8  ;;  %1711 = vmatprep.subr.bf16.mxu1 %v1795_v8  ;;  %v1817_v62 = vld [vmem:[%s2211_s28 + $0x30] sm:$0xff]   ;;  %v1819_v0 = vld [vmem:[%s2211_s28 + $0x38] sm:$0xff]   ;;  %v887_v5 = vld [vmem:[%s2226_s18] sm:$0x3] }
  0x58   : > { %v1818_v63 = vld [vmem:[%s2211_s28 + $0x70] sm:$0xff]   ;;  %v1820_v1 = vld [vmem:[%s2211_s28 + $0x78] sm:$0xff]   ;;  %v2301_v6 = vrot.slane %v887_v5, %v1051_v4 }
  0x59   : > { %930 = vperm.xlu0 %1787, %v863_v22   ;;  %935 = vperm.xlu1 %1788, %v864_v25  }
  0x5d   : > { %940 = vperm.xlu0 %1787, %v865_v24   ;;  %945 = vperm.xlu1 %1788, %v866_v29  }
  0x5e   : > { %1667 = vmatpush3.bf16.xpose.msra.mxu0 %v1796_v14  ;;  %1719 = vmatpush3.bf16.xpose.msra.mxu1 %v1796_v14 }
  0x5f   : > { %1668 = vmatprep.subr.bf16.mxu0 %v1797_v15  ;;  %1712 = vmatprep.subr.bf16.mxu1 %v1797_v15 }
  0x61   : > { %950 = vperm.xlu0 %1787, %v867_v28   ;;  %955 = vperm.xlu1 %1788, %v868_v31  }
  0x65   : > { %960 = vperm.xlu0 %1787, %v869_v30   ;;  %965 = vperm.xlu1 %1788, %v870_v35  }
  0x66   : > { %1669 = vmatpush3.bf16.xpose.msra.mxu0 %v1798_v20  ;;  %1720 = vmatpush3.bf16.xpose.msra.mxu1 %v1798_v20 }
  0x67   : > { %1670 = vmatprep.subr.bf16.mxu0 %v1799_v21  ;;  %1713 = vmatprep.subr.bf16.mxu1 %v1799_v21 }
  0x69   : > { %970 = vperm.xlu0 %1787, %v871_v34   ;;  %975 = vperm.xlu1 %1788, %v872_v37  }
  0x6d   : > { %980 = vperm.xlu0 %1787, %v873_v36   ;;  %985 = vperm.xlu1 %1788, %v874_v40  }
  0x6e   : > { %1671 = vmatpush3.bf16.xpose.msra.mxu0 %v1800_v26  ;;  %1721 = vmatpush3.bf16.xpose.msra.mxu1 %v1800_v26 }
  0x6f   : > { %1672 = vmatprep.subr.bf16.mxu0 %v1801_v27  ;;  %1714 = vmatprep.subr.bf16.mxu1 %v1801_v27 }
  0x71   : > { %990 = vperm.xlu0 %1787, %v875_v39   ;;  %995 = vperm.xlu1 %1788, %v876_v42  }
  0x75   : > { %1000 = vperm.xlu0 %1787, %v877_v41   ;;  %1005 = vperm.xlu1 %1788, %v878_v46  }
  0x76   : > { %1673 = vmatpush3.bf16.xpose.msra.mxu0 %v1802_v32  ;;  %1722 = vmatpush3.bf16.xpose.msra.mxu1 %v1802_v32 }
  0x77   : > { %1674 = vmatprep.subr.bf16.mxu0 %v1803_v33  ;;  %1715 = vmatprep.subr.bf16.mxu1 %v1803_v33 }
  0x79   : > { %1010 = vperm.xlu0 %1787, %v879_v45   ;;  %1015 = vperm.xlu1 %1788, %v880_v48  }
  0x7d   : > { %1020 = vperm.xlu0 %1787, %v881_v47   ;;  %1025 = vperm.xlu1 %1788, %v882_v52  }
  0x7e   : > { %1675 = vmatpush3.bf16.xpose.msra.mxu0 %v1804_v38  ;;  %1723 = vmatpush3.bf16.xpose.msra.mxu1 %v1804_v38 }
  0x81   : > { %1030 = vperm.xlu0 %1787, %v883_v51   ;;  %1035 = vperm.xlu1 %1788, %v884_v54  }
  0x85   : > { %1677 = vmatmul.mubr.bf16.vlgmr.msra.gmra.mxu0 %v2236_v9  ;;  %1693 = vmatmul.mubr.bf16.vlgmr.msra.gmra.mxu1 %v2239_v10  ;;  %v2303_v9 = vstv %s405_s26  ;;  %v2305_v10 = vrot.slane %v887_v5, %v1055_v7 }
  0x86   : > { %1678 = vmatprep.mubr.bf16.mxu0 %v1807_v43  ;;  %1694 = vmatprep.mubr.bf16.mxu1 %v1808_v44 }
  0x87   : > { %1040 = vperm.xlu0 %1787, %v885_v53   ;;  %1045 = vperm.xlu1 %1788, %v886_v57  }
  0x8d   : > { %1679 = vmatmul.mubr.bf16.gmra.mxu0 %v1807_v43  ;;  %1695 = vmatmul.mubr.bf16.gmra.mxu1 %v1808_v44 }
  0x8e   : > { %1680 = vmatprep.mubr.bf16.mxu0 %v1809_v49  ;;  %1696 = vmatprep.mubr.bf16.mxu1 %v1810_v50 }
  0x95   : > { %1681 = vmatmul.mubr.bf16.gmra.mxu0 %v1809_v49  ;;  %1697 = vmatmul.mubr.bf16.gmra.mxu1 %v1810_v50 }
  0x96   : > { %1682 = vmatprep.mubr.bf16.mxu0 %v1811_v55  ;;  %1698 = vmatprep.mubr.bf16.mxu1 %v1812_v56 }
  0x9d   : > { %1683 = vmatmul.mubr.bf16.gmra.mxu0 %v1811_v55  ;;  %1699 = vmatmul.mubr.bf16.gmra.mxu1 %v1812_v56 }
  0x9e   : > { %1684 = vmatprep.mubr.bf16.mxu0 %v1813_v58  ;;  %1700 = vmatprep.mubr.bf16.mxu1 %v1814_v59 }
  0xa5   : > { %1685 = vmatmul.mubr.bf16.gmra.mxu0 %v1813_v58  ;;  %1701 = vmatmul.mubr.bf16.gmra.mxu1 %v1814_v59 }
  0xa6   : > { %1686 = vmatprep.mubr.bf16.mxu0 %v1815_v60  ;;  %1702 = vmatprep.mubr.bf16.mxu1 %v1816_v61 }
  0xad   : > { %1687 = vmatmul.mubr.bf16.gmra.mxu0 %v1815_v60  ;;  %1703 = vmatmul.mubr.bf16.gmra.mxu1 %v1816_v61 }
  0xae   : > { %1688 = vmatprep.mubr.bf16.mxu0 %v1817_v62  ;;  %1704 = vmatprep.mubr.bf16.mxu1 %v1818_v63 }
  0xb5   : > { %1689 = vmatmul.mubr.bf16.gmra.mxu0 %v1817_v62  ;;  %1705 = vmatmul.mubr.bf16.gmra.mxu1 %v1818_v63 }
  0xb6   : > { %1690 = vmatprep.mubr.bf16.mxu0 %v1819_v0  ;;  %1706 = vmatprep.mubr.bf16.mxu1 %v1820_v1 }
  0xbd   : > { %1691 = vmatmul.mubr.bf16.gmra.mxu0 %v1819_v0  ;;  %1707 = vmatmul.mubr.bf16.gmra.mxu1 %v1820_v1 }
  0xc4   : > { %v891_v8 = vpop.permute.xlu0 %890  ;;  %v901_v25 = vpop.permute.xlu1 %900 }
  0xc5   : > { %v1059_v11 = vadd.f32 %v2301_v6, %v891_v8  ;;  %v1060_v16 = vadd.f32 %v2305_v10, %v891_v8  ;;  %v1063_v29 = vadd.f32 %v2301_v6, %v901_v25  ;;  %v1064_v39 = vadd.f32 %v2305_v10, %v901_v25 }
  0xc8   : > { %v896_v21 = vpop.permute.xlu0 %895  ;;  %v906_v45 = vpop.permute.xlu1 %905 }
  0xc9   : > { %v1061_v24 = vadd.f32 %v2301_v6, %v896_v21  ;;  %v1062_v28 = vadd.f32 %v2305_v10, %v896_v21  ;;  %v1065_v48 = vadd.f32 %v2301_v6, %v906_v45  ;;  %v1066_v52 = vadd.f32 %v2305_v10, %v906_v45 }
  0xcc   : > { %v911_v51 = vpop.permute.xlu0 %910  ;;  %v916_v63 = vpop.permute.xlu1 %915 }
  0xcd   : > { %v1067_v58 = vadd.f32 %v2301_v6, %v911_v51  ;;  %v1068_v2 = vadd.f32 %v2305_v10, %v911_v51  ;;  %v1069_v8 = vadd.f32 %v2301_v6, %v916_v63  ;;  %v1070_v21 = vadd.f32 %v2305_v10, %v916_v63 }
  0xd0   : > { %v926_v45 = vpop.permute.xlu1 %925 }
 0x145   : > { %v696_v12 = vpop.f32.mrf.mxu0  ;;  %v2308_v13 = vpop.f32.mrf.mxu1 }
 0x146   : > { %v1124_v14 = vmul.f32 %v2303_v9, %v696_v12 }
 0x147   : > { %v698_v15 = vpop.f32.mrf.mxu0  ;;  %v2313_v19 = vpop.f32.mrf.mxu1 }
 0x148   : > { %v1188_v17 = vadd.f32 %v1124_v14, %v1059_v11  ;;  %v1125_v18 = vmul.f32 %v2303_v9, %v698_v15 }
 0x149   : > { %v700_v20 = vpop.f32.mrf.mxu0  ;;  %v2320_v33 = vpop.f32.mrf.mxu1 }
 0x14a   : > { %v1252_v22 = vmul.f32 1.442695, %v1188_v17  ;;  %v1189_v23 = vadd.f32 %v1125_v18, %v1060_v16  ;;  %v1126_v26 = vmul.f32 %v2303_v9, %v700_v20  ;;  %v921_v17 = vpop.permute.xlu0 %920 }
 0x14b   : > { %v702_v27 = vpop.f32.mrf.mxu0  ;;  %v2325_v43 = vpop.f32.mrf.mxu1 }
 0x14c   : > { %v1254_v30 = vmul.f32 1.442695, %v1189_v23  ;;  %v1127_v31 = vmul.f32 %v2303_v9, %v702_v27  ;;  %1821 = vpow2.f32 %v1252_v22  ;;  %v1190_v32 = vadd.f32 %v1126_v26, %v1061_v24 }
 0x14d   : > { %v706_v34 = vpop.f32.mrf.mxu0  ;;  %v2331_v55 = vpop.f32.mrf.mxu1  ;;  %v1071_v27 = vadd.f32 %v2301_v6, %v921_v17 }
 0x14e   : > { %1823 = vpow2.f32 %v1254_v30  ;;  %v1191_v35 = vadd.f32 %v1127_v31, %v1062_v28  ;;  %v1128_v36 = vmul.f32 %v2303_v9, %v706_v34  ;;  %v1256_v37 = vmul.f32 1.442695, %v1190_v32 }
 0x14f   : > { %v708_v38 = vpop.f32.mrf.mxu0  ;;  %v2336_v3 = vpop.f32.mrf.mxu1 }
 0x150   : > { %v1258_v40 = vmul.f32 1.442695, %v1191_v35  ;;  %v1192_v41 = vadd.f32 %v1128_v36, %v1063_v29  ;;  %v1129_v42 = vmul.f32 %v2303_v9, %v708_v38  ;;  %1825 = vpow2.f32 %v1256_v37 }
 0x151   : > { %v710_v44 = vpop.f32.mrf.mxu0  ;;  %v2342_v22 = vpop.f32.mrf.mxu1  ;;  %v1072_v35 = vadd.f32 %v2305_v10, %v921_v17 }
 0x152   : > { %v1260_v46 = vmul.f32 1.442695, %v1192_v41  ;;  %v1193_v47 = vadd.f32 %v1129_v42, %v1064_v39  ;;  %1827 = vpow2.f32 %v1258_v40  ;;  %v1130_v49 = vmul.f32 %v2303_v9, %v710_v44  ;;  %v936_v17 = vpop.permute.xlu1 %935 }
 0x153   : > { %v712_v50 = vpop.f32.mrf.mxu0  ;;  %v2349_v38 = vpop.f32.mrf.mxu1 }
 0x154   : > { %v1262_v53 = vmul.f32 1.442695, %v1193_v47  ;;  %v1131_v54 = vmul.f32 %v2303_v9, %v712_v50  ;;  %1829 = vpow2.f32 %v1260_v46  ;;  %v1194_v56 = vadd.f32 %v1130_v49, %v1065_v48 }
 0x155   : > { %v716_v57 = vpop.f32.mrf.mxu0  ;;  %v1073_v50 = vadd.f32 %v2301_v6, %v926_v45 }
 0x156   : > { %v1195_v59 = vadd.f32 %v1131_v54, %v1066_v52  ;;  %v1132_v60 = vmul.f32 %v2303_v9, %v716_v57  ;;  %1831 = vpow2.f32 %v1262_v53  ;;  %v1264_v61 = vmul.f32 1.442695, %v1194_v56  ;;  %v2353_v54 = vpop.f32.mrf.mxu1 }
 0x157   : > { %v718_v62 = vpop.f32.mrf.mxu0 }
 0x158   : > { %v1266_v0 = vmul.f32 1.442695, %v1195_v59  ;;  %v1196_v1 = vadd.f32 %v1132_v60, %v1067_v58  ;;  %1833 = vpow2.f32 %v1264_v61  ;;  %v1133_v4 = vmul.f32 %v2303_v9, %v718_v62  ;;  %v931_v61 = vpop.permute.xlu0 %930 }
 0x159   : > { %v720_v5 = vpop.f32.mrf.mxu0  ;;  %v1822_v7 = vpop.eup %1821  ;;  %v1074_v58 = vadd.f32 %v2305_v10, %v926_v45 }
 0x15a   : > { %v1268_v11 = vmul.f32 1.442695, %v1196_v1  ;;  %v1134_v12 = vmul.f32 %v2303_v9, %v720_v5  ;;  %1835 = vpow2.f32 %v1266_v0  ;;  %v1197_v15 = vadd.f32 %v1133_v4, %v1068_v2 }
 0x15b   : > { %v1824_v14 = vpop.eup %1823  ;;  %v722_v16 = vpop.f32.mrf.mxu0  ;;  %v1075_v1 = vadd.f32 %v2301_v6, %v931_v61 }
 0x15c   : > { %v1386_v18 = vadd.f32 %v1824_v14, %v1822_v7  ;;  %v1198_v20 = vadd.f32 %v1134_v12, %v1069_v8  ;;  %1837 = vpow2.f32 %v1268_v11  ;;  %v1270_v23 = vmul.f32 1.442695, %v1197_v15  ;;  %v2359_v8 = vpop.f32.mrf.mxu1 }
 0x15d   : > { %v1135_v24 = vmul.f32 %v2303_v9, %v722_v16  ;;  %v726_v25 = vpop.f32.mrf.mxu0  ;;  %v1826_v26 = vpop.eup %1825  ;;  %v1076_v16 = vadd.f32 %v2305_v10, %v931_v61 }
 0x15e   : > { %v1272_v28 = vmul.f32 1.442695, %v1198_v20  ;;  %v1387_v29 = vadd.f32 %v1826_v26, %v1386_v18  ;;  %1839 = vpow2.f32 %v1270_v23  ;;  %v1136_v31 = vmul.f32 %v2303_v9, %v726_v25 }
 0x15f   : > { %v1199_v30 = vadd.f32 %v1135_v24, %v1070_v21  ;;  %v728_v32 = vpop.f32.mrf.mxu0  ;;  %v1828_v34 = vpop.eup %1827  ;;  %v1077_v24 = vadd.f32 %v2301_v6, %v936_v17 }
 0x160   : > { %v1137_v36 = vmul.f32 %v2303_v9, %v728_v32  ;;  %v1388_v37 = vadd.f32 %v1828_v34, %v1387_v29  ;;  %1841 = vpow2.f32 %v1272_v28  ;;  %v1200_v40 = vadd.f32 %v1136_v31, %v1071_v27  ;;  %v2365_v28 = vpop.f32.mrf.mxu1  ;;  %v941_v34 = vpop.permute.xlu0 %940 }
 0x161   : > { %v1274_v39 = vmul.f32 1.442695, %v1199_v30  ;;  %v730_v41 = vpop.f32.mrf.mxu0  ;;  %v1830_v42 = vpop.eup %1829 }
 0x162   : > { %v1201_v44 = vadd.f32 %v1137_v36, %v1072_v35  ;;  %v1389_v46 = vadd.f32 %v1830_v42, %v1388_v37  ;;  %v1276_v47 = vmul.f32 1.442695, %v1200_v40  ;;  %v1138_v52 = vmul.f32 %v2303_v9, %v730_v41 }
 0x163   : > { %1843 = vpow2.f32 %v1274_v39  ;;  %v732_v48 = vpop.f32.mrf.mxu0  ;;  %v1832_v49 = vpop.eup %1831  ;;  %v1078_v35 = vadd.f32 %v2305_v10, %v936_v17  ;;  %v1079_v42 = vadd.f32 %v2301_v6, %v941_v34 }
 0x164   : > { %v1278_v51 = vmul.f32 1.442695, %v1201_v44  ;;  %v1390_v53 = vadd.f32 %v1832_v49, %v1389_v46  ;;  %1845 = vpow2.f32 %v1276_v47  ;;  %v1202_v59 = vadd.f32 %v1138_v52, %v1073_v50  ;;  %v2370_v46 = vpop.f32.mrf.mxu1 }
 0x165   : > { %v736_v56 = vpop.f32.mrf.mxu0  ;;  %v1834_v57 = vpop.eup %1833  ;;  %v1139_v60 = vmul.f32 %v2303_v9, %v732_v48 }
 0x166   : > { %v1391_v62 = vadd.f32 %v1834_v57, %v1390_v53  ;;  %1847 = vpow2.f32 %v1278_v51  ;;  %v1280_v2 = vmul.f32 1.442695, %v1202_v59  ;;  %v1140_v5 = vmul.f32 %v2303_v9, %v736_v56  ;;  %v946_v59 = vpop.permute.xlu1 %945  ;;  %v2375_v61 = vpop.f32.mrf.mxu1 }
 0x167   : > { %v738_v63 = vpop.f32.mrf.mxu0  ;;  %v1836_v0 = vpop.eup %1835  ;;  %v1203_v4 = vadd.f32 %v1139_v60, %v1074_v58  ;;  %v1080_v58 = vadd.f32 %v2305_v10, %v941_v34 }
 0x168   : > { %v1392_v7 = vadd.f32 %v1836_v0, %v1391_v62  ;;  %1849 = vpow2.f32 %v1280_v2  ;;  %v1204_v15 = vadd.f32 %v1140_v5, %v1075_v1  ;;  %v1141_v20 = vmul.f32 %v2303_v9, %v738_v63  ;;  %v951_v1 = vpop.permute.xlu0 %950 }
 0x169   : > { %v740_v11 = vpop.f32.mrf.mxu0  ;;  %v1838_v12 = vpop.eup %1837  ;;  %v1282_v14 = vmul.f32 1.442695, %v1203_v4  ;;  %v1081_v2 = vadd.f32 %v2301_v6, %v946_v59 }
 0x16a   : > { %v1393_v18 = vadd.f32 %v1838_v12, %v1392_v7  ;;  %v1284_v25 = vmul.f32 1.442695, %v1204_v15  ;;  %v1142_v26 = vmul.f32 %v2303_v9, %v740_v11  ;;  %v1205_v29 = vadd.f32 %v1141_v20, %v1076_v16 }
 0x16b   : > { %v742_v21 = vpop.f32.mrf.mxu0  ;;  %v1840_v23 = vpop.eup %1839  ;;  %1851 = vpow2.f32 %v1282_v14  ;;  %v1082_v11 = vadd.f32 %v2305_v10, %v946_v59  ;;  %v1083_v20 = vadd.f32 %v2301_v6, %v951_v1 }
 0x16c   : > { %v1394_v27 = vadd.f32 %v1840_v23, %v1393_v18  ;;  %1853 = vpow2.f32 %v1284_v25  ;;  %v1206_v32 = vadd.f32 %v1142_v26, %v1077_v24  ;;  %v1286_v37 = vmul.f32 1.442695, %v1205_v29  ;;  %v961_v34 = vpop.permute.xlu0 %960 }
 0x16d   : > { %v746_v30 = vpop.f32.mrf.mxu0  ;;  %v1842_v31 = vpop.eup %1841  ;;  %v1143_v39 = vmul.f32 %v2303_v9, %v742_v21 }
 0x16e   : > { %v1395_v36 = vadd.f32 %v1842_v31, %v1394_v27  ;;  %v1288_v44 = vmul.f32 1.442695, %v1206_v32  ;;  %1855 = vpow2.f32 %v1286_v37  ;;  %v1144_v48 = vmul.f32 %v2303_v9, %v746_v30  ;;  %v2382_v21 = vpop.f32.mrf.mxu1  ;;  %v956_v30 = vpop.permute.xlu1 %955 }
 0x16f   : > { %v748_v40 = vpop.f32.mrf.mxu0  ;;  %v1207_v47 = vadd.f32 %v1143_v39, %v1078_v35  ;;  %v1084_v37 = vadd.f32 %v2305_v10, %v951_v1 }
 0x170   : > { %v1844_v41 = vpop.eup %1843  ;;  %1857 = vpow2.f32 %v1288_v44  ;;  %v1208_v53 = vadd.f32 %v1144_v48, %v1079_v42  ;;  %v1145_v60 = vmul.f32 %v2303_v9, %v748_v40  ;;  %v2386_v39 = vpop.f32.mrf.mxu1  ;;  %v1085_v44 = vadd.f32 %v2301_v6, %v956_v30 }
 0x171   : > { %v1396_v45 = vadd.f32 %v1844_v41, %v1395_v36  ;;  %v750_v49 = vpop.f32.mrf.mxu0  ;;  %v1846_v50 = vpop.eup %1845  ;;  %v1290_v52 = vmul.f32 1.442695, %v1207_v47 }
 0x172   : > { %v1292_v63 = vmul.f32 1.442695, %v1208_v53  ;;  %v1209_v4 = vadd.f32 %v1145_v60, %v1080_v58  ;;  %v1146_v5 = vmul.f32 %v2303_v9, %v750_v49  ;;  %v1086_v53 = vadd.f32 %v2305_v10, %v956_v30  ;;  %v971_v1 = vpop.permute.xlu0 %970 }
 0x173   : > { %v1397_v51 = vadd.f32 %v1846_v50, %v1396_v45  ;;  %v752_v56 = vpop.f32.mrf.mxu0  ;;  %v1848_v57 = vpop.eup %1847  ;;  %1859 = vpow2.f32 %v1290_v52 }
 0x174   : > { %1861 = vpow2.f32 %v1292_v63  ;;  %v1147_v12 = vmul.f32 %v2303_v9, %v752_v56  ;;  %v1294_v16 = vmul.f32 1.442695, %v1209_v4  ;;  %v1210_v17 = vadd.f32 %v1146_v5, %v1081_v2  ;;  %v966_v56 = vpop.permute.xlu1 %965 }
 0x175   : > { %v1398_v62 = vadd.f32 %v1848_v57, %v1397_v51  ;;  %v756_v0 = vpop.f32.mrf.mxu0  ;;  %v1850_v7 = vpop.eup %1849  ;;  %v1087_v63 = vadd.f32 %v2301_v6, %v961_v34 }
 0x176   : > { %v1211_v23 = vadd.f32 %v1147_v12, %v1082_v11  ;;  %1863 = vpow2.f32 %v1294_v16  ;;  %v1296_v26 = vmul.f32 1.442695, %v1210_v17  ;;  %v1148_v27 = vmul.f32 %v2303_v9, %v756_v0  ;;  %v2392_v57 = vpop.f32.mrf.mxu1 }
 0x177   : > { %v758_v14 = vpop.f32.mrf.mxu0  ;;  %v1399_v15 = vadd.f32 %v1850_v7, %v1398_v62  ;;  %v1091_v12 = vadd.f32 %v2301_v6, %v971_v1 }
 0x178   : > { %v1852_v18 = vpop.eup %1851  ;;  %v1298_v31 = vmul.f32 1.442695, %v1211_v23  ;;  %1865 = vpow2.f32 %v1296_v26  ;;  %v1212_v36 = vadd.f32 %v1148_v27, %v1083_v20  ;;  %v1149_v40 = vmul.f32 %v2303_v9, %v758_v14  ;;  %v976_v26 = vpop.permute.xlu1 %975 }
 0x179   : > { %v760_v24 = vpop.f32.mrf.mxu0  ;;  %v1400_v25 = vadd.f32 %v1852_v18, %v1399_v15  ;;  %v1854_v29 = vpop.eup %1853  ;;  %v1156_v14 = vmul.f32 %v2303_v9, %v2308_v13  ;;  %v1088_v20 = vadd.f32 %v2305_v10, %v961_v34  ;;  %v1089_v23 = vadd.f32 %v2301_v6, %v966_v56 }
 0x17a   : > { %1867 = vpow2.f32 %v1298_v31  ;;  %v1300_v45 = vmul.f32 1.442695, %v1212_v36  ;;  %v1150_v47 = vmul.f32 %v2303_v9, %v760_v24  ;;  %v1213_v49 = vadd.f32 %v1149_v40, %v1084_v37  ;;  %v2400_v15 = vpop.f32.mrf.mxu1 }
 0x17b   : > { %v762_v32 = vpop.f32.mrf.mxu0  ;;  %v1401_v35 = vadd.f32 %v1854_v29, %v1400_v25  ;;  %v1856_v42 = vpop.eup %1855  ;;  %v1157_v27 = vmul.f32 %v2303_v9, %v2313_v19  ;;  %v1092_v31 = vadd.f32 %v2305_v10, %v971_v1  ;;  %v1220_v37 = vadd.f32 %v1156_v14, %v1091_v12 }
 0x17c   : > { %1869 = vpow2.f32 %v1300_v45  ;;  %v1214_v52 = vadd.f32 %v1150_v47, %v1085_v44  ;;  %v1302_v59 = vmul.f32 1.442695, %v1213_v49  ;;  %v1151_v60 = vmul.f32 %v2303_v9, %v762_v32 }
 0x17d   : > { %v766_v41 = vpop.f32.mrf.mxu0  ;;  %v1402_v48 = vadd.f32 %v1856_v42, %v1401_v35  ;;  %v1858_v51 = vpop.eup %1857  ;;  %v1093_v32 = vadd.f32 %v2301_v6, %v976_v26  ;;  %v1158_v40 = vmul.f32 %v2303_v9, %v2320_v33  ;;  %v1090_v42 = vadd.f32 %v2305_v10, %v966_v56 }
 0x17e   : > { %v1304_v0 = vmul.f32 1.442695, %v1214_v52  ;;  %1871 = vpow2.f32 %v1302_v59  ;;  %v1215_v4 = vadd.f32 %v1151_v60, %v1086_v53  ;;  %v1152_v5 = vmul.f32 %v2303_v9, %v766_v41  ;;  %v2412_v41 = vpop.f32.mrf.mxu1  ;;  %v981_v56 = vpop.permute.xlu0 %980 }
 0x17f   : > { %v768_v50 = vpop.f32.mrf.mxu0  ;;  %v1403_v58 = vadd.f32 %v1858_v51, %v1402_v48  ;;  %v1094_v49 = vadd.f32 %v2305_v10, %v976_v26  ;;  %v1159_v52 = vmul.f32 %v2303_v9, %v2325_v43  ;;  %v1316_v59 = vmul.f32 1.442695, %v1220_v37 }
 0x180   : > { %v1860_v62 = vpop.eup %1859  ;;  %1873 = vpow2.f32 %v1304_v0  ;;  %v1306_v17 = vmul.f32 1.442695, %v1215_v4  ;;  %v1216_v18 = vadd.f32 %v1152_v5, %v1087_v63  ;;  %v1153_v24 = vmul.f32 %v2303_v9, %v768_v50 }
 0x181   : > { %v1404_v2 = vadd.f32 %v1860_v62, %v1403_v58  ;;  %v770_v7 = vpop.f32.mrf.mxu0  ;;  %v1862_v11 = vpop.eup %1861  ;;  %v1221_v50 = vadd.f32 %v1157_v27, %v1092_v31  ;;  %v1222_v60 = vadd.f32 %v1158_v40, %v1093_v32  ;;  %v1160_v63 = vmul.f32 %v2303_v9, %v2331_v55 }
 0x182   : > { %1875 = vpow2.f32 %v1306_v17  ;;  %v1308_v29 = vmul.f32 1.442695, %v1216_v18  ;;  %v1154_v13 = vmul.f32 %v2303_v9, %v770_v7  ;;  %v1217_v34 = vadd.f32 %v1153_v24, %v1088_v20  ;;  %v2419_v62 = vpop.f32.mrf.mxu1  ;;  %v986_v17 = vpop.permute.xlu1 %985 }
 0x183   : > { %v1405_v16 = vadd.f32 %v1862_v11, %v1404_v2  ;;  %v1864_v25 = vpop.eup %1863  ;;  %v772_v30 = vpop.f32.mrf.mxu0  ;;  %v1095_v2 = vadd.f32 %v2301_v6, %v981_v56  ;;  %v1318_v5 = vmul.f32 1.442695, %v1221_v50  ;;  %v1223_v43 = vadd.f32 %v1159_v52, %v1094_v49 }
 0x184   : > { %1877 = vpow2.f32 %v1308_v29  ;;  %v1218_v19 = vadd.f32 %v1154_v13, %v1089_v23  ;;  %v1310_v45 = vmul.f32 1.442695, %v1217_v34  ;;  %v1155_v47 = vmul.f32 %v2303_v9, %v772_v30  ;;  %v2427_v12 = vpop.f32.mrf.mxu1  ;;  %v991_v32 = vpop.permute.xlu0 %990 }
 0x185   : > { %v1406_v35 = vadd.f32 %v1864_v25, %v1405_v16  ;;  %v1866_v36 = vpop.eup %1865  ;;  %v1161_v7 = vmul.f32 %v2303_v9, %v2336_v3  ;;  %v1096_v11 = vadd.f32 %v2305_v10, %v981_v56  ;;  %v1320_v55 = vmul.f32 1.442695, %v1222_v60 }
 0x186   : > { %v1312_v51 = vmul.f32 1.442695, %v1218_v19  ;;  %1879 = vpow2.f32 %v1310_v45  ;;  %v1219_v33 = vadd.f32 %v1155_v47, %v1090_v42  ;;  %v1224_v18 = vadd.f32 %v1160_v63, %v1095_v2  ;;  %v2436_v13 = vpop.f32.mrf.mxu1  ;;  %v996_v47 = vpop.permute.xlu1 %995 }
 0x187   : > { %v1407_v44 = vadd.f32 %v1866_v36, %v1406_v35  ;;  %v1868_v48 = vpop.eup %1867  ;;  %v1162_v20 = vmul.f32 %v2303_v9, %v2342_v22  ;;  %v1097_v23 = vadd.f32 %v2301_v6, %v986_v17  ;;  %v1322_v3 = vmul.f32 1.442695, %v1223_v43 }
 0x188   : > { %1881 = vpow2.f32 %v1312_v51  ;;  %v1314_v1 = vmul.f32 1.442695, %v1219_v33  ;;  %v1225_v26 = vadd.f32 %v1161_v7, %v1096_v11  ;;  %v1163_v27 = vmul.f32 %v2303_v9, %v2349_v38  ;;  %v2443_v45 = vpop.f32.mrf.mxu1 }
 0x189   : > { %v1408_v53 = vadd.f32 %v1868_v48, %v1407_v44  ;;  %v1870_v58 = vpop.eup %1869  ;;  %v1164_v29 = vmul.f32 %v2303_v9, %v2353_v54  ;;  %v1098_v22 = vadd.f32 %v2305_v10, %v986_v17  ;;  %v1324_v35 = vmul.f32 1.442695, %v1224_v18 }
 0x18a   : > { %1883 = vpow2.f32 %v1314_v1  ;;  %v1226_v34 = vadd.f32 %v1162_v20, %v1097_v23  ;;  %v1099_v36 = vadd.f32 %v2301_v6, %v991_v32  ;;  %v1165_v37 = vmul.f32 %v2303_v9, %v2359_v8  ;;  %v2451_v63 = vpop.f32.mrf.mxu1 }
 0x18b   : > { %v1409_v0 = vadd.f32 %v1870_v58, %v1408_v53  ;;  %v1872_v4 = vpop.eup %1871  ;;  %1885 = vpow2.f32 %v1316_v59  ;;  %v1326_v38 = vmul.f32 1.442695, %v1225_v26  ;;  %v1227_v19 = vadd.f32 %v1163_v27, %v1098_v22 }
 0x18c   : > { %1887 = vpow2.f32 %v1318_v5  ;;  %v1100_v42 = vadd.f32 %v2305_v10, %v991_v32  ;;  %v1228_v44 = vadd.f32 %v1164_v29, %v1099_v36  ;;  %v1328_v48 = vmul.f32 1.442695, %v1226_v34  ;;  %v2459_v17 = vpop.f32.mrf.mxu1 }
 0x18d   : > { %v1410_v14 = vadd.f32 %v1872_v4, %v1409_v0  ;;  %v1874_v16 = vpop.eup %1873  ;;  %1889 = vpow2.f32 %v1320_v55  ;;  %v1166_v49 = vmul.f32 %v2303_v9, %v2365_v28  ;;  %v1101_v8 = vadd.f32 %v2301_v6, %v996_v47  ;;  %v1001_v0 = vpop.permute.xlu0 %1000 }
 0x18e   : > { %1891 = vpow2.f32 %v1322_v3  ;;  %v1229_v52 = vadd.f32 %v1165_v37, %v1100_v42  ;;  %v1330_v53 = vmul.f32 1.442695, %v1227_v19  ;;  %v1167_v33 = vmul.f32 %v2303_v9, %v2370_v46  ;;  %v1006_v55 = vpop.permute.xlu1 %1005  ;;  %v2469_v32 = vpop.f32.mrf.mxu1 }
 0x18f   : > { %v1411_v24 = vadd.f32 %v1874_v16, %v1410_v14  ;;  %v1876_v25 = vpop.eup %1875  ;;  %1893 = vpow2.f32 %v1324_v35  ;;  %v1102_v60 = vadd.f32 %v2305_v10, %v996_v47  ;;  %v1332_v56 = vmul.f32 1.442695, %v1228_v44 }
 0x190   : > { %1895 = vpow2.f32 %v1326_v38  ;;  %v1230_v28 = vadd.f32 %v1166_v49, %v1101_v8  ;;  %v1168_v1 = vmul.f32 %v2303_v9, %v2375_v61  ;;  %v1103_v5 = vadd.f32 %v2301_v6, %v1001_v0  ;;  %v838_v44 = vpop.f32.mrf.mxu1 }
 0x191   : > { %v1412_v30 = vadd.f32 %v1876_v25, %v1411_v24  ;;  %v1878_v31 = vpop.eup %1877  ;;  %1897 = vpow2.f32 %v1328_v48  ;;  %v1334_v43 = vmul.f32 1.442695, %v1229_v52  ;;  %v1231_v46 = vadd.f32 %v1167_v33, %v1102_v60 }
 0x192   : > { %1899 = vpow2.f32 %v1330_v53  ;;  %v1169_v7 = vmul.f32 %v2303_v9, %v2382_v21  ;;  %v1104_v16 = vadd.f32 %v2305_v10, %v1001_v0  ;;  %v1336_v18 = vmul.f32 1.442695, %v1230_v28  ;;  %v1016_v47 = vpop.permute.xlu1 %1015 }
 0x193   : > { %v1413_v40 = vadd.f32 %v1878_v31, %v1412_v30  ;;  %v1880_v54 = vpop.eup %1879  ;;  %1901 = vpow2.f32 %v1332_v56  ;;  %v1232_v61 = vadd.f32 %v1168_v1, %v1103_v5  ;;  %v1170_v20 = vmul.f32 %v2303_v9, %v2386_v39  ;;  %v1011_v39 = vpop.permute.xlu0 %1010 }
 0x194   : > { %v1105_v25 = vadd.f32 %v2301_v6, %v1006_v55  ;;  %1903 = vpow2.f32 %v1334_v43  ;;  %v1338_v3 = vmul.f32 1.442695, %v1231_v46  ;;  %v1233_v21 = vadd.f32 %v1169_v7, %v1104_v16  ;;  %v840_v56 = vpop.f32.mrf.mxu1 }
 0x195   : > { %v1414_v50 = vadd.f32 %v1880_v54, %v1413_v40  ;;  %v1882_v51 = vpop.eup %1881  ;;  %v1171_v26 = vmul.f32 %v2303_v9, %v2392_v57  ;;  %v1106_v30 = vadd.f32 %v2305_v10, %v1006_v55  ;;  %v1172_v31 = vmul.f32 %v2303_v9, %v2400_v15 }
 0x196   : > { %1905 = vpow2.f32 %v1336_v18  ;;  %v1340_v22 = vmul.f32 1.442695, %v1232_v61  ;;  %v1234_v35 = vadd.f32 %v1170_v20, %v1105_v25  ;;  %v1107_v37 = vadd.f32 %v2301_v6, %v1011_v39  ;;  %v1026_v16 = vpop.permute.xlu1 %1025 }
 0x197   : > { %v1415_v58 = vadd.f32 %v1882_v51, %v1414_v50  ;;  %v1884_v59 = vpop.eup %1883  ;;  %v1173_v57 = vmul.f32 %v2303_v9, %v2412_v41  ;;  %1907 = vpow2.f32 %v1338_v3  ;;  %v1342_v40 = vmul.f32 1.442695, %v1233_v21  ;;  %v1021_v28 = vpop.permute.xlu0 %1020 }
 0x198   : > { %v1886_v4 = vpop.eup %1885  ;;  %v1235_v38 = vadd.f32 %v1171_v26, %v1106_v30  ;;  %v1108_v15 = vadd.f32 %v2305_v10, %v1011_v39  ;;  %v1236_v42 = vadd.f32 %v1172_v31, %v1107_v37  ;;  %1909 = vpow2.f32 %v1340_v22 }
 0x199   : > { %v1416_v2 = vadd.f32 %v1884_v59, %v1415_v58  ;;  %v1888_v14 = vpop.eup %1887  ;;  %v1344_v48 = vmul.f32 1.442695, %v1234_v35  ;;  %v1174_v49 = vmul.f32 %v2303_v9, %v2419_v62  ;;  %v1109_v8 = vadd.f32 %v2301_v6, %v1016_v47 }
 0x19a   : > { %v1890_v24 = vpop.eup %1889  ;;  %v1237_v41 = vadd.f32 %v1173_v57, %v1108_v15  ;;  %1911 = vpow2.f32 %v1342_v40  ;;  %v1346_v52 = vmul.f32 1.442695, %v1235_v38  ;;  %v1175_v53 = vmul.f32 %v2303_v9, %v2427_v12 }
 0x19b   : > { %v1417_v11 = vadd.f32 %v1886_v4, %v1416_v2  ;;  %v1892_v29 = vpop.eup %1891  ;;  %v1110_v59 = vadd.f32 %v2305_v10, %v1016_v47  ;;  %v1348_v60 = vmul.f32 1.442695, %v1236_v42  ;;  %1913 = vpow2.f32 %v1344_v48  ;;  %v1031_v30 = vpop.permute.xlu0 %1030 }
 0x19c   : > { %v1894_v36 = vpop.eup %1893  ;;  %v1238_v62 = vadd.f32 %v1174_v49, %v1109_v8  ;;  %v1176_v1 = vmul.f32 %v2303_v9, %v2436_v13  ;;  %v1111_v4 = vadd.f32 %v2301_v6, %v1021_v28  ;;  %v1350_v5 = vmul.f32 1.442695, %v1237_v41 }
 0x19d   : > { %v1418_v23 = vadd.f32 %v1888_v14, %v1417_v11  ;;  %v1896_v54 = vpop.eup %1895  ;;  %1915 = vpow2.f32 %v1346_v52  ;;  %v1239_v12 = vadd.f32 %v1175_v53, %v1110_v59  ;;  %v1177_v46 = vmul.f32 %v2303_v9, %v2443_v45  ;;  %v842_v14 = vpop.f32.mrf.mxu1 }
 0x19e   : > { %v1898_v51 = vpop.eup %1897  ;;  %v1112_v11 = vadd.f32 %v2305_v10, %v1021_v28  ;;  %1917 = vpow2.f32 %v1348_v60  ;;  %v1352_v55 = vmul.f32 1.442695, %v1238_v62  ;;  %v1240_v18 = vadd.f32 %v1176_v1, %v1111_v4 }
 0x19f   : > { %v1419_v27 = vadd.f32 %v1890_v24, %v1418_v23  ;;  %v1900_v58 = vpop.eup %1899  ;;  %v1178_v13 = vmul.f32 %v2303_v9, %v2451_v63  ;;  %v1113_v23 = vadd.f32 %v2301_v6, %v1026_v16  ;;  %1919 = vpow2.f32 %v1350_v5 }
 0x1a0   : > { %v1902_v0 = vpop.eup %1901  ;;  %v1354_v24 = vmul.f32 1.442695, %v1239_v12  ;;  %v1241_v25 = vadd.f32 %v1177_v46, %v1112_v11  ;;  %v1179_v45 = vmul.f32 %v2303_v9, %v2459_v17  ;;  %v1114_v26 = vadd.f32 %v2305_v10, %v1026_v16 }
 0x1a1   : > { %v1420_v34 = vadd.f32 %v1892_v29, %v1419_v27  ;;  %v1904_v43 = vpop.eup %1903  ;;  %v1180_v27 = vmul.f32 %v2303_v9, %v2469_v32  ;;  %v846_v29 = vpop.f32.mrf.mxu1  ;;  %1921 = vpow2.f32 %v1352_v55  ;;  %v1356_v63 = vmul.f32 1.442695, %v1240_v18 }
 0x1a2   : > { %v1242_v31 = vadd.f32 %v1178_v13, %v1113_v23  ;;  %v1115_v35 = vadd.f32 %v2301_v6, %v1031_v30  ;;  %1923 = vpow2.f32 %v1354_v24  ;;  %v1358_v17 = vmul.f32 1.442695, %v1241_v25 }
 0x1a3   : > { %v1421_v19 = vadd.f32 %v1894_v36, %v1420_v34  ;;  %v1906_v20 = vpop.eup %1905  ;;  %v1181_v34 = vmul.f32 %v2303_v9, %v838_v44  ;;  %v1243_v36 = vadd.f32 %v1179_v45, %v1114_v26  ;;  %v1116_v40 = vadd.f32 %v2305_v10, %v1031_v30  ;;  %v848_v32 = vpop.f32.mrf.mxu1 }
 0x1a4   : > { %v1908_v21 = vpop.eup %1907  ;;  %v1244_v38 = vadd.f32 %v1180_v27, %v1115_v35  ;;  %1925 = vpow2.f32 %v1356_v63  ;;  %v1182_v15 = vmul.f32 %v2303_v9, %v840_v56  ;;  %v1041_v44 = vpop.permute.xlu0 %1040  ;;  %v1184_v60 = vmul.f32 %v2303_v9, %v846_v29 }
 0x1a5   : > { %v1422_v50 = vadd.f32 %v1896_v54, %v1421_v19  ;;  %v1910_v22 = vpop.eup %1909  ;;  %v1036_v19 = vpop.permute.xlu1 %1035  ;;  %v1360_v54 = vmul.f32 1.442695, %v1242_v31  ;;  %v1245_v49 = vadd.f32 %v1181_v34, %v1116_v40  ;;  %1927 = vpow2.f32 %v1358_v17 }
 0x1a6   : > { %v1117_v48 = vadd.f32 %v2301_v6, %v1036_v19  ;;  %v1118_v52 = vadd.f32 %v2305_v10, %v1036_v19  ;;  %v1364_v53 = vmul.f32 1.442695, %v1244_v38  ;;  %v1185_v4 = vmul.f32 %v2303_v9, %v848_v32 }
 0x1a7   : > { %v1423_v33 = vadd.f32 %v1898_v51, %v1422_v50  ;;  %v1912_v57 = vpop.eup %1911  ;;  %v1362_v50 = vmul.f32 1.442695, %v1243_v36  ;;  %v1183_v51 = vmul.f32 %v2303_v9, %v842_v14  ;;  %1929 = vpow2.f32 %v1360_v54 }
 0x1a8   : > { %v1914_v47 = vpop.eup %1913  ;;  %v1246_v59 = vadd.f32 %v1182_v15, %v1117_v48  ;;  %v1366_v28 = vmul.f32 1.442695, %v1245_v49 }
 0x1a9   : > { %v1424_v2 = vadd.f32 %v1900_v58, %v1423_v33  ;;  %v850_v33 = vpop.f32.mrf.mxu1  ;;  %v1046_v1 = vpop.permute.xlu1 %1045  ;;  %1931 = vpow2.f32 %v1362_v50 }
 0x1aa   : > { %v1916_v41 = vpop.eup %1915  ;;  %1933 = vpow2.f32 %v1364_v53  ;;  %v1368_v46 = vmul.f32 1.442695, %v1246_v59  ;;  %v1186_v11 = vmul.f32 %v2303_v9, %v850_v33  ;;  %v1121_v55 = vadd.f32 %v2301_v6, %v1046_v1  ;;  %v1385_v33 = vld [vmem:[%s2202_s20] sm:$0xff] }
 0x1ab   : > { %v1425_v7 = vadd.f32 %v1902_v0, %v1424_v2  ;;  %v1918_v58 = vpop.eup %1917  ;;  %v1119_v0 = vadd.f32 %v2301_v6, %v1041_v44  ;;  %v1247_v2 = vadd.f32 %v1183_v51, %v1118_v52  ;;  %v852_v12 = vpop.f32.mrf.mxu1  ;;  %1935 = vpow2.f32 %v1366_v28 }
 0x1ac   : > { %v1920_v62 = vpop.eup %1919  ;;  %v1122_v24 = vadd.f32 %v2305_v10, %v1046_v1  ;;  %1937 = vpow2.f32 %v1368_v46  ;;  %v1250_v45 = vadd.f32 %v1186_v11, %v1121_v55 }
 0x1ad   : > { %v1426_v61 = vadd.f32 %v1904_v43, %v1425_v7  ;;  %v1120_v43 = vadd.f32 %v2305_v10, %v1041_v44  ;;  %v1248_v7 = vadd.f32 %v1184_v60, %v1119_v0  ;;  %v1370_v18 = vmul.f32 1.442695, %v1247_v2 }
 0x1ae   : > { %v1922_v16 = vpop.eup %1921  ;;  %v1376_v6 = vmul.f32 1.442695, %v1250_v45 }
 0x1af   : > { %v1427_v3 = vadd.f32 %v1906_v20, %v1426_v61  ;;  %v1249_v13 = vadd.f32 %v1185_v4, %v1120_v43  ;;  %v1187_v61 = vmul.f32 %v2303_v9, %v852_v12  ;;  %v1924_v23 = vpop.eup %1923  ;;  %v1372_v25 = vmul.f32 1.442695, %v1248_v7 }
 0x1b0   : > { %1939 = vpow2.f32 %v1370_v18 }
 0x1b1   : > { %v1428_v39 = vadd.f32 %v1908_v21, %v1427_v3  ;;  %v1926_v21 = vpop.eup %1925  ;;  %v1374_v26 = vmul.f32 1.442695, %v1249_v13  ;;  %v1251_v27 = vadd.f32 %v1187_v61, %v1122_v24  ;;  %1941 = vpow2.f32 %v1372_v25 }
 0x1b2   : > { %v1928_v30 = vpop.eup %1927 }
 0x1b3   : > { %v1429_v37 = vadd.f32 %v1910_v22, %v1428_v39  ;;  %1943 = vpow2.f32 %v1374_v26  ;;  %v1378_v9 = vmul.f32 1.442695, %v1251_v27 }
 0x1b4   : > { %v1930_v31 = vpop.eup %1929  ;;  %1945 = vpow2.f32 %v1376_v6 }
 0x1b5   : > { %v1430_v42 = vadd.f32 %v1912_v57, %v1429_v37  ;;  %1947 = vpow2.f32 %v1378_v9 }
 0x1b6   : > { %v1932_v22 = vpop.eup %1931 }
 0x1b7   : > { %v1431_v8 = vadd.f32 %v1914_v47, %v1430_v42  ;;  %v1934_v35 = vpop.eup %1933 }
 0x1b8   : > { %v1936_v34 = vpop.eup %1935 }
 0x1b9   : > { %v1432_v56 = vadd.f32 %v1916_v41, %v1431_v8  ;;  %v1938_v37 = vpop.eup %1937 }
 0x1bb   : > { %v1433_v5 = vadd.f32 %v1918_v58, %v1432_v56 }
 0x1bd   : > { %v1434_v14 = vadd.f32 %v1920_v62, %v1433_v5  ;;  %v1940_v40 = vpop.eup %1939 }
 0x1be   : > { %v1942_v32 = vpop.eup %1941 }
 0x1bf   : > { %v1435_v20 = vadd.f32 %v1922_v16, %v1434_v14 }
 0x1c0   : > { %v1944_v54 = vpop.eup %1943 }
 0x1c1   : > { %v1436_v3 = vadd.f32 %v1924_v23, %v1435_v20  ;;  %v1946_v42 = vpop.eup %1945 }
 0x1c2   : > { %v1948_v48 = vpop.eup %1947 }
 0x1c3   : > { %v1437_v29 = vadd.f32 %v1926_v21, %v1436_v3 }
 0x1c5   : > { %v1438_v63 = vadd.f32 %v1928_v30, %v1437_v29 }
 0x1c7   : > { %v1439_v39 = vadd.f32 %v1930_v31, %v1438_v63 }
 0x1c9   : > { %v1440_v10 = vadd.f32 %v1932_v22, %v1439_v39 }
 0x1cb   : > { %v1441_v17 = vadd.f32 %v1934_v35, %v1440_v10 }
 0x1cd   : > { %v1442_v36 = vadd.f32 %v1936_v34, %v1441_v17 }
 0x1cf   : > { %v1443_v57 = vadd.f32 %v1938_v37, %v1442_v36 }
 0x1d1   : > { %v1444_v38 = vadd.f32 %v1940_v40, %v1443_v57 }
 0x1d3   : > { %v1445_v19 = vadd.f32 %v1942_v32, %v1444_v38 }
 0x1d5   : > { %v1446_v15 = vadd.f32 %v1944_v54, %v1445_v19 }
 0x1d7   : > { %v1447_v47 = vadd.f32 %v1946_v42, %v1446_v15 }
 0x1d9   : > { %v1448_v49 = vadd.f32 %v1948_v48, %v1447_v47 }
 0x1db   : > { %1449 = vadd.xlane.f32.xlu0 %v1448_v49 }
 0x264   : > { %v1450_v44 = vpop.xlane.xlu0 %1449 }
 0x265   : > { %v1451_v50 = vrot.slane %v1450_v44, 4 }
 0x267   : > { %v1452_v51 = vadd.f32 %v1451_v50, %v1450_v44 }
 0x269   : > { %v1453_v8 = vrot.slane %v1452_v51, 2 }
 0x26b   : > { %v1454_v41 = vadd.f32 %v1453_v8, %v1452_v51 }
 0x26d   : > { %v1455_v52 = vrot.slane %v1454_v41, 1 }
 0x26f   : > { %v1456_v53 = vadd.f32 %v1455_v52, %v1454_v41 }
 0x271   : > { %1724 = vpush %v1456_v53 }
 0x2a2   : > { %s1725_s30 = spop %1724 }
 0x2a3   : > { %v1459_v58 = vstv %s1725_s30 }
 0x2a4   : > { %v1460_v59 = vadd.f32 %v1459_v58, %v1385_v33 }
 0x2a6   : > { %1461 = vst [vmem:[%s2202_s20] sm:$0xff] %v1460_v59 }
 0x2a7 PF: > { %s1654_s14 = sshll.u32 %s2059_s25, 7  ;;  %s1477_s3 = sshll.u32 %s2202_s20, 4  ;;  %s1478_s3 = int_to_ptr.vmem [resolvable:$true] %s1477_s3 }
 0x2a8   : > { %s1475_s0 = scalar_lea.hbm %s2559_s9, %s1654_s14  ;;  %s2571_s21 = sand.u32 1, %s2051_s24  }
 0x2a9   : > { %s1463_s2 = scalar_lea.sflag [#allocation9], %s2571_s21  ;;  %s1989_s28 = scalar_lea.vmem %s1478_s3, 128 }
 0x2aa   : > { %p1990_p1 = scmp.ne.s32.totalorder %s1478_s3, %s1989_s28  ;;  %s2075_s29 = smov [#allocation8]  }
 0x2ab   : > { %s1993_s10 = sshll.u32 %s2075_s29, 4  ;;  %s1994_s10 = int_to_ptr.vmem [resolvable:$false] %s1993_s10 }
 0x2ac   : > { %p1991_p2 = pnand %p1990_p1, %p2181_p0  ;;  %s1995_s12 = scalar_lea.vmem %s1994_s10, 256 }
 0x2ad   : > { %p1996_p5 = scmp.lt.s32.totalorder %s1478_s3, %s1994_s10  ;;  %p1997_p6 = scmp.lt.s32.totalorder %s1995_s12, %s1989_s28 }
 0x2ae   : > { %p1992_p3 = pneg %p1991_p2 }
 0x2af   : > { %p1998_p7 = por %p1997_p6, %p1996_p5 }
 0x2b1   : > { %p1999_p8 = pnand %p1998_p7, %p1992_p3 }
 0x2b3   : > { %2002 = shalt.err (!%p1999_p8)
}
 0x2b4   : > { %s2003_s25 = scalar_lea.hbm %s1475_s0, 128  ;;  %s2007_s16 = scalar_lea.hbm %s2559_s9, 384 }
 0x2b5   : > { %p2004_p9 = scmp.ne.s32.totalorder %s1475_s0, %s2003_s25  ;;  %p2008_p12 = scmp.lt.s32.totalorder %s1475_s0, %s2559_s9 }
 0x2b6   : > { %p2009_p13 = scmp.lt.s32.totalorder %s2007_s16, %s2003_s25 }
 0x2b7   : > { %p2005_p10 = pnand %p2004_p9, %p2181_p0 }
 0x2b8   : > { %p2010_p1 = por %p2009_p13, %p2008_p12 }
 0x2b9   : > { %p2006_p11 = pneg %p2005_p10 }
 0x2bb   : > { %p2011_p2 = pnand %p2010_p1, %p2006_p11 }
 0x2bd   : > { %2014 = shalt.err (!%p2011_p2)
}
 0x2be   : > { %1726 = dma.vmem_to_hbm [thread:$0]  (%p2181_p0), %s1478_s3, 128, %s1475_s0, %s1463_s2  }
 0x2bf PF: > { %p1732_p3 = scmp.ge.s32.totalorder %s2067_s27, 2  ;;  %s1489_s18 = sand.u32 1, %s2047_s23  }
 0x2c0   : > { %s1490_s26 = scalar_lea.sflag [#allocation9], %s1489_s18 }
 0x2c1   : > { %p1729_p5 = pnand %p1732_p3, %p2188_p4 }
 0x2c3   : > { %p1730_p6 = pneg %p1729_p5 }
 0x2c5   : > { %2042 = dma.done.wait (%p1730_p6), %s1490_s26, 128  }
 0x2c6   : > { %2044 = vsyncadd (%p1730_p6), %s1490_s26, 4294967168  ;;  %s37_s27 = sadd.s32 1, %s2067_s27   ;;  %s2572_s30 = sld [smem:[#allocation14_spill]] }
 0x2c7   : > { %p34_p7 = scmp.ge.s32.totalorder %s37_s27, 5   ;;  %s2573_s25 = sld [smem:[#allocation12_spill]] }
 0x2c8   : > { %s2574_s26 = sld [smem:[#allocation13_spill]]  ;;  %s2575_s23 = smov %s2051_s24 }
 0x2c9   : > { %s2576_s24 = smov %s2055_s4  ;;  %36 = sbr.rel (!%p34_p7) target bundleno = 31 (0x1f), region = 88 }
 0x2cc   : > { %s2577_s4 = smov %s2572_s30 }
 0x2ce   :  { %1495 = vsyncpa [#allocation9], 1 }
 0x2cf   :  { %1497 = vsyncpa [#allocation9 + $0x1], 1 }

</bundles_post_ra>
